<compile_context>
chip_gen: v7x
topology: tpu7x:2x2x1
jax: 0.10.0
libtpu: 0.0.40
codegen_flags: <defaults>
</compile_context>

<pallas_src>
import jax
import jax.numpy as jnp
import numpy as np
from jax.experimental import pallas as pl
from jax.experimental.pallas import tpu as pltpu  # noqa: F401  (TPU backend assumed)

# Hyperparameters from ProteinDesigner_A.__init__ defaults
TEXT_EMBED_DIM = 512      # fc_embed2: nn.Linear(1, 512)
POS_EMBED_DIM = 32        # embed_dim_position
MAX_TEXT_LEN = 16         # max_text_len
OUT_DIM = TEXT_EMBED_DIM + POS_EMBED_DIM   # 544


def _text_embed_kernel(cond_ref, wb_ref, pos_ref, out_ref):
    """Fused unsqueeze(2) + nn.Linear(1, 512) + positional-embedding concat.

    cond_ref : (B, L)        raw conditioning scalars (lane-dense rows)
    wb_ref   : (2, E)        row 0 = fc_embed2.weight[:, 0], row 1 = bias
    pos_ref  : (L, P)        pos_emb_x.weight rows 1..L
    out_ref  : (B, L, E + P) text embeddings (E = 512, P = 32)
    """
    c = cond_ref[...]                              # (B, L)
    B, L = c.shape
    w = wb_ref[0:1, :]                             # (1, E)
    b = wb_ref[1:2, :]                             # (1, E)

    # nn.Linear(1, E) applied to a scalar feature is an outer product plus bias:
    #   out[b, l, e] = cond[b, l] * W[e, 0] + bias[e]
    out_ref[:, :, 0:TEXT_EMBED_DIM] = (
        c[:, :, None] * w[None, :, :] + b[None, :, :]
    )

    # Positional block is batch-invariant: broadcast rows 1..L over the batch dim.
    pos = pos_ref[...]                             # (L, P)
    out_ref[:, :, TEXT_EMBED_DIM:OUT_DIM] = jnp.broadcast_to(
        pos[None, :, :], (B, L, POS_EMBED_DIM)
    )


def text_condition_forward(cond, w2, b2, pos_table):
    """JAX/Pallas equivalent of ProteinDesigner_A.forward steps 1-4.

    cond      : (B, L) float32, L <= MAX_TEXT_LEN
    w2        : (TEXT_EMBED_DIM, 1)                  -- fc_embed2.weight
    b2        : (TEXT_EMBED_DIM,)                    -- fc_embed2.bias
    pos_table : (MAX_TEXT_LEN + 1, POS_EMBED_DIM)    -- pos_emb_x.weight
    returns   : (B, L, TEXT_EMBED_DIM + POS_EMBED_DIM) text embeddings
    """
    B, L = cond.shape
    assert L <= MAX_TEXT_LEN

    cond_f32 = cond.astype(jnp.float32)                                   # (B, L)
    # Merge weight column + bias into a single (2, E) parameter tile.
    wb = jnp.stack([w2[:, 0].astype(jnp.float32),
                    b2.astype(jnp.float32)], axis=0)                      # (2, E)
    # pos_matrix_i[i] = i + 1; rows >= L are zeroed then sliced away -> rows 1..L.
    pos_rows = pos_table[1:L + 1].astype(jnp.float32)                     # (L, P)

    # Single grid step: the whole problem is one block (no pipeline overhead).
    return pl.pallas_call(
        _text_embed_kernel,
        out_shape=jax.ShapeDtypeStruct((B, L, OUT_DIM), jnp.float32),
        in_specs=[
            pl.BlockSpec((B, L), lambda: (0, 0)),
            pl.BlockSpec((2, TEXT_EMBED_DIM), lambda: (0, 0)),
            pl.BlockSpec((L, POS_EMBED_DIM), lambda: (0, 0)),
        ],
        out_specs=pl.BlockSpec((B, L, OUT_DIM), lambda: (0, 0, 0)),
    )(cond_f32, wb, pos_rows)                                             # (B, L, 544)


def _reference(cond, w2, b2, pos_table):
    """Pure-jnp reference mirroring the PyTorch code."""
    B, L = cond.shape
    x = cond[:, :, None]                                        # (B, L, 1)
    x = x * w2[None, None, :, 0] + b2[None, None, :]            # Linear(1, E)
    pos_idx = jnp.arange(1, MAX_TEXT_LEN + 1)                   # pos_matrix_i (+1)
    pos = pos_table[pos_idx]                                    # (MAX_TEXT_LEN, P)
    pos = jnp.broadcast_to(pos[None], (B, MAX_TEXT_LEN, POS_EMBED_DIM))
    mask = (jnp.arange(MAX_TEXT_LEN) < L)[None, :, None]
    pos = jnp.where(mask, pos, 0.0)                             # pos_emb[:, L:, :] = 0
    pos = pos[:, :L, :]                                         # slice to (B, L, P)
    return jnp.concatenate([x, pos], axis=2)


if __name__ == "__main__":
    key = jax.random.PRNGKey(0)
    k_cond, k_w2, k_b2, k_pos = jax.random.split(key, 4)

    B, L = 2, 8          # small shapes consistent with max_text_len=16

    cond = jax.random.normal(k_cond, (B, L), dtype=jnp.float32)
    # Deterministic parameter init (shapes from ProteinDesigner_A.__init__)
    w2 = 0.02 * jax.random.normal(k_w2, (TEXT_EMBED_DIM, 1), dtype=jnp.float32)
    b2 = 0.01 * jax.random.normal(k_b2, (TEXT_EMBED_DIM,), dtype=jnp.float32)
    pos_table = 0.02 * jax.random.normal(
        k_pos, (MAX_TEXT_LEN + 1, POS_EMBED_DIM), dtype=jnp.float32)

    # `output` (the noised protein tensor) would feed the ElucidatedImagen loss:
    output = jax.random.normal(jax.random.PRNGKey(1), (B, 25, 40), dtype=jnp.float32)
    del output  # TODO(synk): consumed only by the untranslatable imagen diffusion loss.

    x = text_condition_forward(cond, w2, b2, pos_table)
    x = jax.block_until_ready(x)

    x_ref = _reference(cond, w2, b2, pos_table)
    np.testing.assert_allclose(np.asarray(x), np.asarray(x_ref), rtol=1e-5, atol=1e-5)

    print("KERNEL_OK")
</pallas_src>

<mosaic_0001>
module attributes {stable_mosaic.version = 11 : i64} {
  func.func @_text_embed_kernel(%arg0: memref<2x8xf32, #tpu.memory_space<vmem>>, %arg1: memref<2x512xf32, #tpu.memory_space<vmem>>, %arg2: memref<8x32xf32, #tpu.memory_space<vmem>>, %arg3: memref<2x8x544xf32, #tpu.memory_space<vmem>>) attributes {dimension_semantics = [], scalar_prefetch = 0 : i64, scratch_operands = 0 : i64, tpu.core_type = #tpu.core_type<tc>} {
    %c0 = arith.constant 0 : index
    %c0_0 = arith.constant 0 : index
    %0 = vector.load %arg0[%c0, %c0_0] : memref<2x8xf32, #tpu.memory_space<vmem>>, vector<2x8xf32>
    %c0_1 = arith.constant 0 : index
    %c0_2 = arith.constant 0 : index
    %1 = vector.load %arg1[%c0_1, %c0_2] : memref<2x512xf32, #tpu.memory_space<vmem>>, vector<1x512xf32>
    %c1 = arith.constant 1 : index
    %c0_3 = arith.constant 0 : index
    %2 = vector.load %arg1[%c1, %c0_3] : memref<2x512xf32, #tpu.memory_space<vmem>>, vector<1x512xf32>
    %3 = vector.shape_cast %0 : vector<2x8xf32> to vector<2x8x1xf32>
    %4 = vector.shape_cast %1 : vector<1x512xf32> to vector<1x1x512xf32>
    %5 = vector.broadcast %3 : vector<2x8x1xf32> to vector<2x8x512xf32>
    %6 = vector.broadcast %4 : vector<1x1x512xf32> to vector<2x8x512xf32>
    %7 = arith.mulf %5, %6 : vector<2x8x512xf32>
    %8 = vector.shape_cast %2 : vector<1x512xf32> to vector<1x1x512xf32>
    %9 = vector.broadcast %8 : vector<1x1x512xf32> to vector<2x8x512xf32>
    %10 = arith.addf %7, %9 : vector<2x8x512xf32>
    %c0_4 = arith.constant 0 : index
    %c0_5 = arith.constant 0 : index
    %c0_6 = arith.constant 0 : index
    %11 = vector.load %arg3[%c0_4, %c0_5, %c0_6] : memref<2x8x544xf32, #tpu.memory_space<vmem>>, vector<2x8x512xf32>
    tpu.vector_store %arg3[%c0_4, %c0_5, %c0_6], %10 {strides = array<i32>} : memref<2x8x544xf32, #tpu.memory_space<vmem>>, vector<2x8x512xf32>,
    %c0_7 = arith.constant 0 : index
    %c0_8 = arith.constant 0 : index
    %12 = vector.load %arg2[%c0_7, %c0_8] : memref<8x32xf32, #tpu.memory_space<vmem>>, vector<8x32xf32>
    %13 = vector.shape_cast %12 : vector<8x32xf32> to vector<1x8x32xf32>
    %14 = vector.shape_cast %13 : vector<1x8x32xf32> to vector<1x8x32xf32>
    %15 = vector.broadcast %14 : vector<1x8x32xf32> to vector<2x8x32xf32>
    %c0_9 = arith.constant 0 : index
    %c0_10 = arith.constant 0 : index
    %c512 = arith.constant 512 : index
    %16 = vector.load %arg3[%c0_9, %c0_10, %c512] : memref<2x8x544xf32, #tpu.memory_space<vmem>>, vector<2x8x32xf32>
    tpu.vector_store %arg3[%c0_9, %c0_10, %c512], %15 {strides = array<i32>} : memref<2x8x544xf32, #tpu.memory_space<vmem>>, vector<2x8x32xf32>,
    return
  }
}

</mosaic_0001>

<bundles_post_ra>
// kernel: tpu_custom_call.1
= control target key start
LH: loop header
LB: loop body
LE: loop exit
PB: predicated region body
PF: predicated region fallthrough
CT: control target
= control target key end

     0   :  { %8 = vsyncpa [#allocation3], 0  ;;  %s330_s0 = inlined_call_operand.hbm [shape: f32[2,8], index: 0, kind: input, shape index: {}]   ;;  %s331_s1 = inlined_call_operand.hbm [shape: f32[2,512], index: 1, kind: input, shape index: {}]   ;;  %s332_s2 = inlined_call_operand.hbm [shape: f32[8,32], index: 2, kind: input, shape index: {}]   ;;  %s333_s3 = inlined_call_operand.hbm [shape: f32[2,8,544], index: 3, kind: output, shape index: {}]  }
   0x1   :  { %9 = vsyncpa [#allocation6], 0 }
   0x2   :  { %10 = vsyncpa [#allocation4], 0  ;;  %s256_s12 = smov [#allocation5]   ;;  %s257_s14 = smov [#allocation2]  }
   0x3   :  { %s27_s13 = sshll.u32 %s256_s12, 4  ;;  %s17_s15 = sshll.u32 %s257_s14, 4  ;;  %s28_s13 = int_to_ptr.vmem [resolvable:$true] %s27_s13  ;;  %s18_s15 = int_to_ptr.vmem [resolvable:$true] %s17_s15 }
   0x4   :  { %s162_s18 = scalar_lea.hbm %s331_s1, 128 }
   0x5   :  { %p163_p0 = scmp.ne.s32.totalorder %s331_s1, %s162_s18  ;;  %p166_p1 = scmp.lt.u32.totalorder %s162_s18, %s331_s1 }
   0x7   :  { %p168_p2 = pnand %p166_p1, %p163_p0 }
   0x9   :  { %171 = shalt.err (!%p168_p2)
}
   0xa   :  { %s172_s23 = scalar_lea.vmem %s28_s13, 128  ;;  %p177_p4 = scmp.lt.s32.totalorder %s28_s13, %s28_s13 }
   0xb   :  { %p173_p3 = scmp.ne.s32.totalorder %s28_s13, %s172_s23  ;;  %p178_p5 = scmp.lt.s32.totalorder %s172_s23, %s172_s23 }
   0xd   :  { %p179_p6 = por %p178_p5, %p177_p4 }
   0xf   :  { %p180_p7 = pnand %p179_p6, %p173_p3 }
  0x11   :  { %183 = shalt.err (!%p180_p7)
}
  0x12   :  { %30 = dma.hbm_to_vmem [thread:$0]  %s331_s1, 128, %s28_s13, [#allocation6]  }
  0x13   :  { %s184_s28 = scalar_lea.hbm %s330_s0, 32 }
  0x14   :  { %p185_p8 = scmp.ne.s32.totalorder %s330_s0, %s184_s28  ;;  %p188_p9 = scmp.lt.u32.totalorder %s184_s28, %s330_s0 }
  0x16   :  { %p190_p10 = pnand %p188_p9, %p185_p8 }
  0x18   :  { %193 = shalt.err (!%p190_p10)
}
  0x19   :  { %s194_s6 = scalar_lea.vmem %s18_s15, 32  ;;  %p199_p12 = scmp.lt.s32.totalorder %s18_s15, %s18_s15 }
  0x1a   :  { %p195_p11 = scmp.ne.s32.totalorder %s18_s15, %s194_s6  ;;  %p200_p13 = scmp.lt.s32.totalorder %s194_s6, %s194_s6 }
  0x1c   :  { %p201_p0 = por %p200_p13, %p199_p12 }
  0x1e   :  { %p202_p1 = pnand %p201_p0, %p195_p11 }
  0x20   :  { %205 = shalt.err (!%p202_p1)
}
  0x21   :  { %20 = dma.hbm_to_vmem [thread:$0]  %s330_s0, 32, %s18_s15, [#allocation3]  }
  0x22   :  { %s258_s8 = smov [#allocation7]   ;;  %s206_s12 = scalar_lea.hbm %s332_s2, 128 }
  0x23   :  { %s37_s9 = sshll.u32 %s258_s8, 4  ;;  %p207_p2 = scmp.ne.s32.totalorder %s332_s2, %s206_s12  ;;  %s38_s9 = int_to_ptr.vmem [resolvable:$true] %s37_s9 }
  0x24   :  { %p210_p3 = scmp.lt.u32.totalorder %s206_s12, %s332_s2 }
  0x26   :  { %p212_p4 = pnand %p210_p3, %p207_p2 }
  0x28   :  { %215 = shalt.err (!%p212_p4)
}
  0x29   :  { %s216_s18 = scalar_lea.vmem %s38_s9, 128  ;;  %p221_p6 = scmp.lt.s32.totalorder %s38_s9, %s38_s9 }
  0x2a   :  { %p217_p5 = scmp.ne.s32.totalorder %s38_s9, %s216_s18  ;;  %p222_p7 = scmp.lt.s32.totalorder %s216_s18, %s216_s18 }
  0x2c   :  { %p223_p8 = por %p222_p7, %p221_p6 }
  0x2e   :  { %p224_p9 = pnand %p223_p8, %p217_p5 }
  0x30   :  { %227 = shalt.err (!%p224_p9)
}
  0x31   :  { %40 = dma.hbm_to_vmem [thread:$0]  %s332_s2, 128, %s38_s9, [#allocation6]  }
  0x32   :  { %250 = dma.done.wait [#allocation3], 32  }
  0x33   :  { %251 = vsyncadd [#allocation3], 4294967264 }
  0x34   :  { %252 = dma.done.wait [#allocation6], 256  }
  0x35   :  { %253 = vsyncadd [#allocation6], 4294967040  ;;  %v54_v0 = vlaneseq  ;;  %vm135_vm0 = vcmask 261120   ;;  %v50_v4 = vld [vmem:[#allocation2] sm:$0x3]  ;;  %v134_v5 = vld [vmem:[#allocation7] sm:$0xff] }
  0x36   :  { %136 = vst.msk [vmem:[#allocation8 + $0x20] sm:$0xff] %vm135_vm0, %v134_v5  ;;  %137 = vst.msk [vmem:[#allocation8 + $0x48] sm:$0xff] %vm135_vm0, %v134_v5  ;;  %v51_v10 = vld [vmem:[#allocation5] ss:$2 sm:$0xf]  ;;  %s259_s2 = smov [#allocation8]  }
  0x37   :  { %v55_v1 = vshrl.u32 %v54_v0, 7  ;;  %v53_v11 = vld [vmem:[#allocation5 + $0x1] ss:$2 sm:$0xf]  ;;  %s143_s19 = sshll.u32 %s259_s2, 4  ;;  %s144_s19 = int_to_ptr.vmem [resolvable:$true] %s143_s19 }
  0x38   :  { %s228_s20 = scalar_lea.vmem %s144_s19, 1280  ;;  %p233_p11 = scmp.lt.s32.totalorder %s144_s19, %s144_s19 }
  0x39   :  { %v56_v2 = vsub.s32 0, %v55_v1  ;;  %v63_v3 = vsub.s32 1, %v55_v1  ;;  %v79_v8 = vsub.s32 2, %v55_v1  ;;  %v83_v9 = vsub.s32 3, %v55_v1  ;;  %p229_p10 = scmp.ne.s32.totalorder %s144_s19, %s228_s20  ;;  %p234_p12 = scmp.lt.s32.totalorder %s228_s20, %s228_s20 }
  0x3b   :  { %v57_v6 = vrot.slane %v50_v4, %v56_v2  ;;  %v64_v7 = vrot.slane %v50_v4, %v63_v3  ;;  %v72_v12 = vrot.slane %v51_v10, %v56_v2  ;;  %v76_v13 = vrot.slane %v51_v10, %v63_v3  ;;  %p235_p13 = por %p234_p12, %p233_p11 }
  0x3c   :  { %v80_v14 = vrot.slane %v51_v10, %v79_v8  ;;  %v84_v15 = vrot.slane %v51_v10, %v83_v9  ;;  %v101_v16 = vrot.slane %v53_v11, %v56_v2  ;;  %v105_v17 = vrot.slane %v53_v11, %v63_v3 }
  0x3d   :  { %59 = vbcast.lane.b32.xlu0 %v57_v6, 256  ;;  %v109_v18 = vrot.slane %v53_v11, %v79_v8  ;;  %v113_v19 = vrot.slane %v53_v11, %v83_v9  ;;  %p236_p0 = pnand %p235_p13, %p229_p10 }
  0x41   :  { %66 = vbcast.lane.b32.xlu0 %v64_v7, 256 }
  0xaf   :  { %v60_v20 = vpop.permute.xlu0 %59 }
  0xb0   :  { %v89_v21 = vmul.f32 %v72_v12, %v60_v20  ;;  %v90_v22 = vmul.f32 %v76_v13, %v60_v20  ;;  %v91_v23 = vmul.f32 %v80_v14, %v60_v20  ;;  %v92_v24 = vmul.f32 %v84_v15, %v60_v20 }
  0xb2   :  { %v118_v25 = vadd.f32 %v101_v16, %v89_v21  ;;  %v119_v26 = vadd.f32 %v105_v17, %v90_v22  ;;  %v120_v27 = vadd.f32 %v109_v18, %v91_v23  ;;  %v121_v28 = vadd.f32 %v113_v19, %v92_v24 }
  0xb3   :  { %v67_v29 = vpop.permute.xlu0 %66 }
  0xb4   :  { %126 = vst [vmem:[#allocation8] sm:$0xff] %v118_v25  ;;  %127 = vst [vmem:[#allocation8 + $0x8] sm:$0xff] %v119_v26  ;;  %v93_v30 = vmul.f32 %v72_v12, %v67_v29  ;;  %v94_v31 = vmul.f32 %v76_v13, %v67_v29  ;;  %v95_v32 = vmul.f32 %v80_v14, %v67_v29 }
  0xb5   :  { %128 = vst [vmem:[#allocation8 + $0x10] sm:$0xff] %v120_v27  ;;  %129 = vst [vmem:[#allocation8 + $0x18] sm:$0xff] %v121_v28  ;;  %v96_v33 = vmul.f32 %v84_v15, %v67_v29 }
  0xb6   :  { %v122_v34 = vadd.f32 %v101_v16, %v93_v30  ;;  %v123_v35 = vadd.f32 %v105_v17, %v94_v31  ;;  %v124_v36 = vadd.f32 %v109_v18, %v95_v32 }
  0xb7   :  { %v125_v37 = vadd.f32 %v113_v19, %v96_v33 }
  0xb8   :  { %130 = vst [vmem:[#allocation8 + $0x28] sm:$0xff] %v122_v34  ;;  %131 = vst [vmem:[#allocation8 + $0x30] sm:$0xff] %v123_v35 }
  0xb9   :  { %132 = vst [vmem:[#allocation8 + $0x38] sm:$0xff] %v124_v36  ;;  %133 = vst [vmem:[#allocation8 + $0x40] sm:$0xff] %v125_v37 }
  0xba   :  { %239 = shalt.err (!%p236_p0)
}
  0xbb   :  { %s240_s23 = scalar_lea.hbm %s333_s3, 1280 }
  0xbc   :  { %p241_p1 = scmp.ne.s32.totalorder %s333_s3, %s240_s23  ;;  %p244_p2 = scmp.lt.u32.totalorder %s240_s23, %s333_s3 }
  0xbe   :  { %p246_p3 = pnand %p244_p2, %p241_p1 }
  0xc0   :  { %249 = shalt.err (!%p246_p3)
}
  0xc1   :  { %s260_s28 = smov 640   ;;  %s261_s29 = smov 40  }
  0xc2   :  { %149 = dma.vmem_to_hbm [thread:$0]  %s144_s19, 1280, %s333_s3, [#allocation4], %s260_s28, %s260_s28, %s261_s29  }
  0xc3   :  { %254 = dma.done.wait [#allocation4], 1280  }
  0xc4   :  { %255 = vsyncadd [#allocation4], 4294966016 }
  0xc5   :  { %153 = vsyncpa [#allocation3], 1 }
  0xc6   :  { %154 = vsyncpa [#allocation6], 1 }
  0xc7   :  { %155 = vsyncpa [#allocation4], 1 }

</bundles_post_ra>
